<compile_context>
chip_gen: v5e
topology: v5e:2x2
jax: 0.10.0
libtpu: 0.0.40
codegen_flags: <defaults>
</compile_context>

<pallas_src>
import functools

import jax
import jax.numpy as jnp
from jax import lax
from jax.experimental import pallas as pl
from jax.experimental.pallas import tpu as pltpu


def _click_loss_kernel(rc_ref, g_ref, out_ref, m_ref, s_ref, *,
                       beta, n_items, tn, n_neg, mask_cols):
    """Grid = (batch_tiles, n_item_chunks).  Online logsumexp over the item
    axis; per-row loss emitted at the last item chunk."""
    k = pl.program_id(1)

    @pl.when(k == 0)
    def _():
        m_ref[...] = jnp.full_like(m_ref, -jnp.inf)
        s_ref[...] = jnp.zeros_like(s_ref)

    rc = rc_ref[...].astype(jnp.float32)                       # (tb, tn)
    if mask_cols:
        # Only needed when tn does not divide n_items (OOB lanes are garbage).
        valid = lax.broadcasted_iota(jnp.int32, rc.shape, 1) < (n_items - k * tn)
        rc = jnp.where(valid, rc, -jnp.inf)

    m_prev = m_ref[...]                                        # (tb, 1)
    m_new = jnp.maximum(m_prev, jnp.max(rc, axis=-1, keepdims=True))
    alpha = jnp.exp(m_prev - m_new)                            # 0 at k == 0
    s_ref[...] = s_ref[...] * alpha + jnp.sum(jnp.exp(rc - m_new),
                                              axis=-1, keepdims=True)
    m_ref[...] = m_new

    @pl.when(k == pl.num_programs(1) - 1)
    def _():
        m = m_ref[...]                                         # (tb, 1)
        s = s_ref[...]                                         # (tb, 1)
        log_s = jnp.log(s)
        g = g_ref[...].astype(jnp.float32)                     # (tb, 1+n_neg)
        # -log softmax(rc)[target] = logsumexp - rc[target]
        pos = (m + log_s) - g[:, 0:1]                          # (tb, 1)
        if n_neg > 0:
            # -log(1 - p_neg) = log S - log(S - exp(rc_neg - m))
            e_neg = jnp.exp(g[:, 1:] - m)                      # (tb, n_neg)
            neg = jnp.sum(log_s - jnp.log(s - e_neg), axis=-1, keepdims=True)
            res = pos + beta * neg
        else:
            res = pos
        out_ref[...] = res


def _choose_tiles(batch, n_items, itemsize, n_gathered,
                  block_rows=None, block_cols=None,
                  vmem_budget_bytes=20 << 20):
    """Byte-budgeted tile selection (no hard row cap)."""
    row_align = 8 if itemsize >= 4 else (16 if itemsize == 2 else 32)

    if block_cols is not None:
        tn = block_cols
    elif n_items <= 4096:
        tn = n_items                      # full rows, single item chunk
    else:
        tn = 2048                         # multiple of 128 -> item-axis chunks

    if block_rows is not None:
        tb = block_rows
    else:
        g_lanes = -(-n_gathered // 128) * 128
        # per-row bytes: rc double-buffered + ~3 f32 (tb, tn) temporaries +
        # lane-padded gathered/output (double-buffered) + m/s VMEM scratch.
        per_row = tn * (2 * itemsize + 3 * 4) + (2 * g_lanes + 4 * 128) * 4
        tb = max(row_align,
                 (vmem_budget_bytes // per_row) // row_align * row_align)
        b_ceil = -(-batch // row_align) * row_align
        tb = min(tb, b_ceil)              # don't over-pad small batches
    return tb, tn


def click_loss(result_click, target, neg_sample=None, beta=1.0,
               block_rows=None, block_cols=None):
    """Pallas equivalent of Loss.forward / Loss.add_neg_loss. Returns a scalar."""
    B, N = result_click.shape
    tgt = target.reshape(B, 1).astype(jnp.int32)
    if neg_sample is not None and neg_sample.shape[1] > 0:
        idx = jnp.concatenate([tgt, neg_sample.astype(jnp.int32)], axis=1)
    else:
        idx = tgt
    G = idx.shape[1]
    n_neg = G - 1

    # One tiny XLA gather (O(B * (n_neg + 1)) elements); the kernel then only
    # streams result_click once.
    gathered = jnp.take_along_axis(result_click, idx, axis=1).astype(jnp.float32)

    itemsize = jnp.dtype(result_click.dtype).itemsize
    tb, tn = _choose_tiles(B, N, itemsize, G, block_rows, block_cols)

    # Pad batch to a multiple of tb (padded rows are harmless and sliced off).
    B_pad = -(-B // tb) * tb
    rc = result_click
    if B_pad != B:
        rc = jnp.pad(rc, ((0, B_pad - B), (0, 0)))
        gathered = jnp.pad(gathered, ((0, B_pad - B), (0, 0)))

    grid = (B_pad // tb, -(-N // tn))

    kern = functools.partial(_click_loss_kernel, beta=float(beta), n_items=N,
                             tn=tn, n_neg=n_neg, mask_cols=(N % tn != 0))

    per_row = pl.pallas_call(
        kern,
        out_shape=jax.ShapeDtypeStruct((B_pad, 1), jnp.float32),
        grid_spec=pltpu.PrefetchScalarGridSpec(
            num_scalar_prefetch=0,
            grid=grid,
            in_specs=[pl.BlockSpec((tb, tn), lambda b, k: (b, k)),
                      pl.BlockSpec((tb, G), lambda b, k: (b, 0))],
            out_specs=pl.BlockSpec((tb, 1), lambda b, k: (b, 0)),
            scratch_shapes=[pltpu.VMEM((tb, 1), jnp.float32),   # running max
                            pltpu.VMEM((tb, 1), jnp.float32)],  # running sum
        ),
        compiler_params=pltpu.CompilerParams(
            dimension_semantics=("parallel", "arbitrary"),
            vmem_limit_bytes=32 << 20),
    )(rc, gathered)

    return jnp.mean(per_row[:B, 0])


def _reference_loss(result_click, target, neg_sample=None, beta=1.0):
    """Pure-JAX reference mirroring the PyTorch code (for validation)."""
    B, N = result_click.shape
    p = jax.nn.softmax(result_click.astype(jnp.float32), axis=1)
    pos_score = -jnp.log(p[jnp.arange(B), target])
    if neg_sample is None:
        return jnp.mean(pos_score)
    flat_idx = (jnp.arange(B)[:, None] * N + neg_sample).flatten()
    neg_p = jnp.take(p.reshape(-1), flat_idx).reshape(B, -1)
    neg_score = -jnp.sum(jnp.log(1.0 - neg_p), axis=-1)
    return jnp.mean(pos_score + beta * neg_score)


if __name__ == "__main__":
    key = jax.random.PRNGKey(0)
    k1, k2, k3, k4, k5, k6 = jax.random.split(key, 6)

    # Case 1: negatives, forced 2 batch tiles, single item chunk.
    B, N, NNEG = 16, 32, 4
    rc1 = jax.random.normal(k1, (B, N), dtype=jnp.float32)
    t1 = jax.random.randint(k2, (B,), 0, N, dtype=jnp.int32)
    ns1 = jax.random.randint(k3, (B, NNEG), 0, N, dtype=jnp.int32)
    got1 = click_loss(rc1, t1, ns1, beta=1.0, block_rows=8)
    ref1 = _reference_loss(rc1, t1, ns1, beta=1.0)

    # Case 2: n_negative == 0 path.
    got2 = click_loss(rc1, t1, None, block_rows=8)
    ref2 = _reference_loss(rc1, t1, None)

    # Case 3: non-multiple-of-8 batch (padded) + item-axis chunking w/ masking.
    B3, N3, NNEG3 = 10, 160, 3
    rc3 = jax.random.normal(k4, (B3, N3), dtype=jnp.float32)
    t3 = jax.random.randint(k5, (B3,), 0, N3, dtype=jnp.int32)
    ns3 = jax.random.randint(k6, (B3, NNEG3), 0, N3, dtype=jnp.int32)
    got3 = click_loss(rc3, t3, ns3, beta=0.5, block_rows=8, block_cols=128)
    ref3 = _reference_loss(rc3, t3, ns3, beta=0.5)

    # Case 4: default (auto) tiling with bf16 input streamed, f32 math in-kernel.
    rc4 = rc1.astype(jnp.bfloat16)
    got4 = click_loss(rc4, t1, ns1, beta=1.0)
    ref4 = _reference_loss(rc4.astype(jnp.float32), t1, ns1, beta=1.0)

    for got, ref in [(got1, ref1), (got2, ref2), (got3, ref3), (got4, ref4)]:
        jax.block_until_ready(got)
        assert jnp.allclose(got, ref, rtol=2e-4, atol=2e-4), (got, ref)

    print("KERNEL_OK")
</pallas_src>

<mosaic_0001>
module attributes {stable_mosaic.version = 11 : i64} {
  func.func @_click_loss_kernel(%arg0: i32, %arg1: i32, %arg2: memref<8x32xf32, #tpu.memory_space<vmem>>, %arg3: memref<8x5xf32, #tpu.memory_space<vmem>>, %arg4: memref<8x1xf32, #tpu.memory_space<vmem>>, %arg5: memref<8x1xf32, #tpu.memory_space<vmem>>, %arg6: memref<8x1xf32, #tpu.memory_space<vmem>>) attributes {dimension_semantics = [#tpu.dimension_semantics<parallel>, #tpu.dimension_semantics<arbitrary>], iteration_bounds = array<i64: 2, 1>, scalar_prefetch = 0 : i64, scratch_operands = 2 : i64, tpu.core_type = #tpu.core_type<tc>, window_params = [{transform_indices = @transform_0, window_bounds = array<i64: 8, 32>}, {transform_indices = @transform_1, window_bounds = array<i64: 8, 5>}, {transform_indices = @transform_2, window_bounds = array<i64: 8, 1>}]} {
    %c0_i32 = arith.constant 0 : i32
    %0 = arith.cmpi eq, %arg1, %c0_i32 : i32
    %1 = arith.extui %0 : i1 to i32
    %c0_i32_0 = arith.constant 0 : i32
    %2 = arith.cmpi ne, %1, %c0_i32_0 : i32
    scf.if %2 {
      %cst_13 = arith.constant 0xFF800000 : f32
      %23 = vector.broadcast %cst_13 : f32 to vector<8x1xf32>
      %c0_14 = arith.constant 0 : index
      %c0_15 = arith.constant 0 : index
      %24 = vector.load %arg5[%c0_14, %c0_15] : memref<8x1xf32, #tpu.memory_space<vmem>>, vector<8x1xf32>
      tpu.vector_store %arg5[%c0_14, %c0_15], %23 {strides = array<i32>} : memref<8x1xf32, #tpu.memory_space<vmem>>, vector<8x1xf32>,
      %cst_16 = arith.constant 0.000000e+00 : f32
      %25 = vector.broadcast %cst_16 : f32 to vector<8x1xf32>
      %c0_17 = arith.constant 0 : index
      %c0_18 = arith.constant 0 : index
      %26 = vector.load %arg6[%c0_17, %c0_18] : memref<8x1xf32, #tpu.memory_space<vmem>>, vector<8x1xf32>
      tpu.vector_store %arg6[%c0_17, %c0_18], %25 {strides = array<i32>} : memref<8x1xf32, #tpu.memory_space<vmem>>, vector<8x1xf32>,
    } else {
    }
    %c0 = arith.constant 0 : index
    %c0_1 = arith.constant 0 : index
    %3 = vector.load %arg2[%c0, %c0_1] : memref<8x32xf32, #tpu.memory_space<vmem>>, vector<8x32xf32>
    %c0_2 = arith.constant 0 : index
    %c0_3 = arith.constant 0 : index
    %4 = vector.load %arg5[%c0_2, %c0_3] : memref<8x1xf32, #tpu.memory_space<vmem>>, vector<8x1xf32>
    %cst = arith.constant dense<0xFF800000> : vector<8xf32>
    %5 = vector.multi_reduction <maximumf>, %3, %cst [1] : vector<8x32xf32> to vector<8xf32>
    %6 = vector.shape_cast %5 : vector<8xf32> to vector<8x1xf32>
    %7 = arith.maximumf %4, %6 : vector<8x1xf32>
    %8 = arith.subf %4, %7 : vector<8x1xf32>
    %9 = math.exp %8 : vector<8x1xf32>
    %c0_4 = arith.constant 0 : index
    %c0_5 = arith.constant 0 : index
    %10 = vector.load %arg6[%c0_4, %c0_5] : memref<8x1xf32, #tpu.memory_space<vmem>>, vector<8x1xf32>
    %11 = arith.mulf %10, %9 : vector<8x1xf32>
    %12 = vector.broadcast %7 : vector<8x1xf32> to vector<8x32xf32>
    %13 = arith.subf %3, %12 : vector<8x32xf32>
    %14 = math.exp %13 : vector<8x32xf32>
    %cst_6 = arith.constant dense<0.000000e+00> : vector<8xf32>
    %15 = vector.multi_reduction <add>, %14, %cst_6 [1] : vector<8x32xf32> to vector<8xf32>
    %16 = vector.shape_cast %15 : vector<8xf32> to vector<8x1xf32>
    %17 = arith.addf %11, %16 : vector<8x1xf32>
    %c0_7 = arith.constant 0 : index
    %c0_8 = arith.constant 0 : index
    %18 = vector.load %arg6[%c0_7, %c0_8] : memref<8x1xf32, #tpu.memory_space<vmem>>, vector<8x1xf32>
    tpu.vector_store %arg6[%c0_7, %c0_8], %17 {strides = array<i32>} : memref<8x1xf32, #tpu.memory_space<vmem>>, vector<8x1xf32>,
    %c0_9 = arith.constant 0 : index
    %c0_10 = arith.constant 0 : index
    %19 = vector.load %arg5[%c0_9, %c0_10] : memref<8x1xf32, #tpu.memory_space<vmem>>, vector<8x1xf32>
    tpu.vector_store %arg5[%c0_9, %c0_10], %7 {strides = array<i32>} : memref<8x1xf32, #tpu.memory_space<vmem>>, vector<8x1xf32>,
    %c0_i32_11 = arith.constant 0 : i32
    %20 = arith.cmpi eq, %arg1, %c0_i32_11 : i32
    %21 = arith.extui %20 : i1 to i32
    %c0_i32_12 = arith.constant 0 : i32
    %22 = arith.cmpi ne, %21, %c0_i32_12 : i32
    scf.if %22 {
      %c0_13 = arith.constant 0 : index
      %c0_14 = arith.constant 0 : index
      %23 = vector.load %arg5[%c0_13, %c0_14] : memref<8x1xf32, #tpu.memory_space<vmem>>, vector<8x1xf32>
      %c0_15 = arith.constant 0 : index
      %c0_16 = arith.constant 0 : index
      %24 = vector.load %arg6[%c0_15, %c0_16] : memref<8x1xf32, #tpu.memory_space<vmem>>, vector<8x1xf32>
      %25 = math.log %24 : vector<8x1xf32>
      %c0_17 = arith.constant 0 : index
      %c0_18 = arith.constant 0 : index
      %26 = vector.load %arg3[%c0_17, %c0_18] : memref<8x5xf32, #tpu.memory_space<vmem>>, vector<8x5xf32>
      %27 = arith.addf %23, %25 : vector<8x1xf32>
      %28 = vector.extract_strided_slice %26 {offsets = [0, 0], sizes = [8, 1], strides = [1, 1]} : vector<8x5xf32> to vector<8x1xf32>
      %29 = arith.subf %27, %28 : vector<8x1xf32>
      %30 = vector.extract_strided_slice %26 {offsets = [0, 1], sizes = [8, 4], strides = [1, 1]} : vector<8x5xf32> to vector<8x4xf32>
      %31 = vector.broadcast %23 : vector<8x1xf32> to vector<8x4xf32>
      %32 = arith.subf %30, %31 : vector<8x4xf32>
      %33 = math.exp %32 : vector<8x4xf32>
      %34 = vector.broadcast %24 : vector<8x1xf32> to vector<8x4xf32>
      %35 = arith.subf %34, %33 : vector<8x4xf32>
      %36 = math.log %35 : vector<8x4xf32>
      %37 = vector.broadcast %25 : vector<8x1xf32> to vector<8x4xf32>
      %38 = arith.subf %37, %36 : vector<8x4xf32>
      %cst_19 = arith.constant dense<0.000000e+00> : vector<8xf32>
      %39 = vector.multi_reduction <add>, %38, %cst_19 [1] : vector<8x4xf32> to vector<8xf32>
      %40 = vector.shape_cast %39 : vector<8xf32> to vector<8x1xf32>
      %cst_20 = arith.constant 1.000000e+00 : f32
      %41 = vector.broadcast %cst_20 : f32 to vector<8x1xf32>
      %42 = arith.mulf %41, %40 : vector<8x1xf32>
      %43 = arith.addf %29, %42 : vector<8x1xf32>
      %c0_21 = arith.constant 0 : index
      %c0_22 = arith.constant 0 : index
      %44 = vector.load %arg4[%c0_21, %c0_22] : memref<8x1xf32, #tpu.memory_space<vmem>>, vector<8x1xf32>
      tpu.vector_store %arg4[%c0_21, %c0_22], %43 {strides = array<i32>} : memref<8x1xf32, #tpu.memory_space<vmem>>, vector<8x1xf32>,
    } else {
    }
    return
  }
  func.func @transform_0(%arg0: i32, %arg1: i32) -> (i32, i32) {
    %c0_i32 = arith.constant 0 : i32
    return %arg0, %arg1 : i32, i32
  }
  func.func @transform_1(%arg0: i32, %arg1: i32) -> (i32, i32) {
    %c0_i32 = arith.constant 0 : i32
    %c0_i32_0 = arith.constant 0 : i32
    return %arg0, %c0_i32 : i32, i32
  }
  func.func @transform_2(%arg0: i32, %arg1: i32) -> (i32, i32) {
    %c0_i32 = arith.constant 0 : i32
    %c0_i32_0 = arith.constant 0 : i32
    return %arg0, %c0_i32 : i32, i32
  }
}

</mosaic_0001>

<bundles_post_ra>
// kernel: tpu_custom_call.1
= control target key start
LH: loop header
LB: loop body
LE: loop exit
PB: predicated region body
PF: predicated region fallthrough
CT: control target
= control target key end

     0   :  { %s425_s9 = smov 0   ;;  %s427_s10 = smov 0   ;;  %s473_s0 = inlined_call_operand.vmem [shape: f32[16,32], index: 0, kind: input, shape index: {}]   ;;  %s474_s1 = inlined_call_operand.vmem [shape: f32[16,5], index: 1, kind: input, shape index: {}]   ;;  %s475_s2 = inlined_call_operand.vmem [shape: f32[16,1], index: 2, kind: output, shape index: {}]  }
   0x1   :  { %s429_s11 = smov 0  }
   0x2 LB: > { %s24_s12 = sadd.s32 1, %s400_s10  ;;  %p335_p0 = scmp.ge.s32.totalorder %s404_s11, 1  ;;  %s404_s11 = sphi %s429_s11, %s12_s11   ;;  %s400_s10 = sphi %s427_s10, %s477_s10   ;;  %s396_s9 = sphi %s425_s9, %s476_s9  }
   0x3   : > { %p26_p1 = scmp.ge.s32.totalorder %s24_s12, 2  ;;  %p137_p2 = scmp.lt.s32.totalorder %s404_s11, 3 }
   0x5   : > { %s479_s12 = smov (%p26_p1, %s24_s12), 0  ;;  %p138_p3 = pnand %p335_p0, %p137_p2 }
   0x6   : > { %p164_p4 = scmp.lt.s32.totalorder (!%p138_p3), %s396_s9, 1  ;;  %s409_s20 = smov (!%p138_p3), 127  }
   0x7   : > { %141 = sbr.rel (%p138_p3) target bundleno = 703 (0x2bf), region = 28 }
   0xc   : > { %vm183_vm0 = vcmask 7168   ;;  %v406_v0 = vmov -inf   ;;  %s481_s9 = smov (!%p164_p4, %s396_s9), 1  ;;  %vm188_vm1 = vcmask 261120   ;;  %v407_v3 = vmov 0  }
   0xd   : > { %184 = vst.msk [vmem:[#allocation2] sm:$0xff] %vm183_vm0, %v406_v0  ;;  %s444_s13 = sshll.u32 %s481_s9, 3  ;;  %369 = vset.pattern.permute.xlu0 %v407_v3  ;;  %370 = vset.pattern.permute.xlu1 %v407_v3  ;;  %v408_v4 = vmov 0.0   ;;  %vm249_vm2 = vcmask 31744  }
   0xe   : > { %s170_s16 = scalar_lea.vmem %s473_s0, %s444_s13  ;;  %371 = vset.pattern.permute.xlu2 %v407_v3  ;;  %185 = vst.msk [vmem:[#allocation3] sm:$0xff] %vm183_vm0, %v408_v4  ;;  %s174_s19 = scalar_lea.vmem %s474_s1, %s444_s13 }
   0xf   : > { %v186_v1 = vld [vmem:[%s170_s16] sm:$0xff]  ;;  %s178_s23 = scalar_lea.vmem %s475_s2, %s444_s13 }
  0x10   : > { %v189_v2 = vsel %vm188_vm1, %v186_v1, -inf  ;;  %v220_v24 = vld [vmem:[%s174_s19] sm:$0xff] }
  0x11   : > { %190 = vmax.xlane.f32.xlu0 %v189_v2 }
  0x14   : > { %v187_v5 = vld [vmem:[#allocation2] sm:$0xff] }
  0x15   : > { %v196_v17 = vld [vmem:[#allocation3] sm:$0xff] }
  0x84   : > { %v191_v6 = vpop.xlane.xlu0 %190 }
  0x85   : > { %v192_v7 = vmax.f32 %v187_v5, %v191_v6 }
  0x87   : > { %v193_v8 = vsub.f32 %v187_v5, %v192_v7  ;;  %212 = vst.msk [vmem:[#allocation2] sm:$0xff] %vm183_vm0, %v192_v7  ;;  %200 = vperm.xlu0 %369, %v192_v7  }
  0x89   : > { %v194_v15 = vmul.f32 1.442695, %v193_v8 }
  0x8e   : > { %v216_v14 = vld [vmem:[#allocation2] sm:$0xff] }
  0xf9   : > { %v201_v9 = vpop.permute.xlu0 %200 }
  0xfa   : > { %v203_v10 = vsub.f32 %v186_v1, %v201_v9 }
  0xfc   : > { %v204_v11 = vmul.f32 1.442695, %v203_v10 }
  0xfe   : > { %372 = vpow2.f32 %v204_v11 }
  0xff   : > { %374 = vpow2.f32 %v194_v15 }
 0x104   : > { %v373_v12 = vpop.eup %372 }
 0x105   : > { %v206_v13 = vsel %vm188_vm1, %v373_v12, 0.0  ;;  %v375_v16 = vpop.eup %374 }
 0x106   : > { %207 = vadd.xlane.f32.xlu1 %v206_v13  ;;  %v197_v18 = vmul.f32 %v375_v16, %v196_v17 }
 0x11f   : > { %225 = vperm.xlu1 %370, %v216_v14  }
 0x179   : > { %v208_v19 = vpop.xlane.xlu1 %207 }
 0x17a   : > { %v209_v20 = vadd.f32 %v208_v19, %v197_v18 }
 0x17c   : > { %211 = vst.msk [vmem:[#allocation3] sm:$0xff] %vm183_vm0, %v209_v20 }
 0x183   : > { %v217_v21 = vld [vmem:[#allocation3] sm:$0xff] }
 0x184   : > { %233 = vperm.xlu2 %371, %v217_v21   ;;  %376 = vlog2.f32 %v217_v21 }
 0x18a   : > { %v377_v22 = vpop.eup %376 }
 0x18b   : > { %v219_v23 = vmul.f32 0.6931472, %v377_v22 }
 0x18d   : > { %241 = vperm.xlu2 %371, %v219_v23   ;;  %v221_v25 = vadd.f32 %v219_v23, %v216_v14 }
 0x18f   : > { %v222_v26 = vsub.f32 %v221_v25, %v220_v24 }
 0x191   : > { %v226_v27 = vpop.permute.xlu1 %225 }
 0x192   : > { %v228_v28 = vsub.f32 %v220_v24, %v226_v27 }
 0x194   : > { %v229_v29 = vmul.f32 1.442695, %v228_v28 }
 0x196   : > { %378 = vpow2.f32 %v229_v29 }
 0x19c   : > { %v379_v30 = vpop.eup %378 }
 0x1de   : > { %v234_v31 = vpop.permute.xlu2 %233 }
 0x1df   : > { %v236_v32 = vsub.f32 %v234_v31, %v379_v30 }
 0x1e1   : > { %380 = vlog2.f32 %v236_v32 }
 0x1e7   : > { %v381_v33 = vpop.eup %380  ;;  %v242_v35 = vpop.permute.xlu2 %241 }
 0x1e8   : > { %v238_v34 = vmul.f32 0.6931472, %v381_v33 }
 0x1ea   : > { %v244_v36 = vsub.f32 %v242_v35, %v238_v34 }
 0x1ec   : > { %246 = vrot.lane.b32.xlu2 %v244_v36, %s409_s20 }
 0x246   : > { %v247_v37 = vpop.permute.xlu2 %246 }
 0x247   : > { %v250_v38 = vsel %vm249_vm2, %v247_v37, 0.0 }
 0x248   : > { %251 = vadd.xlane.f32.xlu2 %v250_v38 }
 0x2bb   : > { %v252_v39 = vpop.xlane.xlu2 %251 }
 0x2bc   : > { %v253_v40 = vadd.f32 %v252_v39, %v222_v26 }
 0x2be   : > { %254 = vst.msk [vmem:[%s178_s23] sm:$0xff] %vm183_vm0, %v253_v40 }
 0x2bf PF: > { %s12_s11 = sadd.s32 1, %s404_s11   ;;  %s476_s9 = smov %s400_s10 }
 0x2c0   : > { %p9_p5 = scmp.ge.s32.totalorder %s12_s11, 4   ;;  %s477_s10 = smov %s479_s12 }
 0x2c2   :  { %11 = sbr.rel (!%p9_p5) target bundleno = 2 (0x2), region = 69 }

</bundles_post_ra>
